<compile_context>
chip_gen: v7x
topology: tpu7x:2x2x1
jax: 0.10.0
libtpu: 0.0.40
codegen_flags: <defaults>
</compile_context>

<pallas_src>
import jax
import jax.numpy as jnp
from jax.experimental import pallas as pl
from jax.experimental.pallas import tpu as pltpu


def _round_up(x, m):
    return (x + m - 1) // m * m


def env2_head_kernel(tok_ref, mask_ref, w_ref, b_ref, out_ref, sum_acc, cnt_acc):
    # tok_ref:  (tb, ts, D)   token-embedding tile (sublanes = S, lanes = D)
    # mask_ref: (tb, ts, 1)   attention-mask tile (broadcasts along lanes)
    # w_ref:    (D, Cp)       fc1 weight (transposed, channel-padded), resident
    # b_ref:    (1, Cp)       fc1 bias (channel-padded), resident
    # out_ref:  (tb, Cp)      logits tile
    # sum_acc:  (tb, D)  f32  running masked sum over S
    # cnt_acc:  (tb, 1)  f32  running mask count over S
    s = pl.program_id(1)

    @pl.when(s == 0)
    def _init():
        sum_acc[...] = jnp.zeros_like(sum_acc)
        cnt_acc[...] = jnp.zeros_like(cnt_acc)

    # Per-tile upcast to f32 for accumulation (input may be bf16).
    tok = tok_ref[...].astype(jnp.float32)              # (tb, ts, D)
    mask = mask_ref[...].astype(jnp.float32)            # (tb, ts, 1)

    sum_acc[...] += jnp.sum(tok * mask, axis=1)         # (tb, D)
    cnt_acc[...] += jnp.sum(mask, axis=1)               # (tb, 1)

    @pl.when(s == pl.num_programs(1) - 1)
    def _finalize():
        # torch.clamp(input_mask_expanded.sum(1), min=1e-09) — applied once.
        pooled = sum_acc[...] / jnp.maximum(cnt_acc[...], 1e-9)   # (tb, D)
        logits = jnp.dot(pooled, w_ref[...],
                         preferred_element_type=jnp.float32)      # (tb, Cp)
        out_ref[...] = (logits + b_ref[...]).astype(out_ref.dtype)


def env2_head(token_embeddings, attention_mask, fc1_weight_t, fc1_bias,
              *, block_b=128, block_s=128):
    """EnV2 mean_pooling + fc1.

    token_embeddings: (B, S, D)  last hidden state of the sbert model
    attention_mask:   (B, S)
    fc1_weight_t:     (D, C)     fc1 weight, pre-transposed
    fc1_bias:         (C,)
    returns:          (B, C) float32 logits
    """
    B, S, D = token_embeddings.shape
    C = fc1_weight_t.shape[1]

    # ---- lane-dense output channels (pad C up to a multiple of 128) --------
    Cp = _round_up(C, 128)
    if Cp != C:
        w = jnp.pad(fc1_weight_t, ((0, 0), (0, Cp - C)))
        b = jnp.pad(fc1_bias, (0, Cp - C))
    else:
        w, b = fc1_weight_t, fc1_bias
    bias2d = b.reshape(1, Cp)

    # ---- tile sizes (batch tile, sequence tile) -----------------------------
    tb = B if B <= block_b else block_b
    Bp = _round_up(B, tb)
    Sp = _round_up(S, 8)
    ts = Sp if Sp <= block_s else block_s
    Sp = _round_up(Sp, ts)

    tok = token_embeddings
    mask = attention_mask
    if (Bp, Sp) != (B, S):
        # Zero-padded rows/tokens contribute nothing (mask pads with 0).
        tok = jnp.pad(tok, ((0, Bp - B), (0, Sp - S), (0, 0)))
        mask = jnp.pad(mask, ((0, Bp - B), (0, Sp - S)))
    # Deliver the mask with S on sublanes so the in-kernel broadcast is along
    # lanes only (no cross-lane relayout).
    mask3 = mask.reshape(Bp, Sp, 1)

    grid = (Bp // tb, Sp // ts)  # (batch [parallel], seq [arbitrary, last])

    out = pl.pallas_call(
        env2_head_kernel,
        out_shape=jax.ShapeDtypeStruct((Bp, Cp), jnp.float32),
        grid_spec=pltpu.PrefetchScalarGridSpec(
            num_scalar_prefetch=0,
            grid=grid,
            in_specs=[
                pl.BlockSpec((tb, ts, D), lambda i, s: (i, s, 0)),
                pl.BlockSpec((tb, ts, 1), lambda i, s: (i, s, 0)),
                pl.BlockSpec((D, Cp), lambda i, s: (0, 0)),   # VMEM-resident
                pl.BlockSpec((1, Cp), lambda i, s: (0, 0)),   # VMEM-resident
            ],
            out_specs=pl.BlockSpec((tb, Cp), lambda i, s: (i, 0)),
            scratch_shapes=[
                pltpu.VMEM((tb, D), jnp.float32),   # masked-sum accumulator
                pltpu.VMEM((tb, 1), jnp.float32),   # mask-count accumulator
            ],
        ),
        compiler_params=pltpu.CompilerParams(
            # batch axis shards across the 2 TensorCores on v7x; seq axis is
            # the sequential reduction.
            dimension_semantics=("parallel", "arbitrary"),
            vmem_limit_bytes=64 * 1024 * 1024,
        ),
    )(tok, mask3, w, bias2d)

    return out[:B, :C]


def reference(token_embeddings, attention_mask, fc1_weight_t, fc1_bias):
    tok = token_embeddings.astype(jnp.float32)
    m = attention_mask.astype(jnp.float32)[:, :, None]
    pooled = jnp.sum(tok * m, axis=1) / jnp.maximum(jnp.sum(m, axis=1), 1e-9)
    return pooled @ fc1_weight_t + fc1_bias


if __name__ == "__main__":
    # Small shapes consistent with the module (real model: D=768, C=2942).
    B, S, D, C = 2, 16, 32, 64

    key = jax.random.PRNGKey(0)
    k_tok, k_w = jax.random.split(key, 2)

    # Stand-in for sbert_model(**encodes)[0] (last hidden state).
    token_embeddings = jax.random.normal(k_tok, (B, S, D), dtype=jnp.float32)

    # Attention mask: first tokens valid, rest padded (deterministic lengths).
    lengths = jnp.array([11, 5], dtype=jnp.int32)
    attention_mask = (jnp.arange(S)[None, :] < lengths[:, None]).astype(jnp.float32)

    # fc1 init: weight.uniform_(-0.5, 0.5), bias zero; stored transposed [D, C].
    fc1_weight_t = jax.random.uniform(k_w, (D, C), minval=-0.5, maxval=0.5,
                                      dtype=jnp.float32)
    fc1_bias = jnp.zeros((C,), dtype=jnp.float32)

    # block_s=8 -> two sequence steps at these toy shapes, exercising the
    # accumulator init/finalize path of the tiled reduction.
    out = env2_head(token_embeddings, attention_mask, fc1_weight_t, fc1_bias,
                    block_b=128, block_s=8)
    out = jax.block_until_ready(out)

    ref = reference(token_embeddings, attention_mask, fc1_weight_t, fc1_bias)
    assert out.shape == (B, C)
    assert jnp.allclose(out, ref, atol=1e-5, rtol=1e-5)

    print("KERNEL_OK")
</pallas_src>

<mosaic_0001>
module attributes {stable_mosaic.version = 11 : i64} {
  func.func @env2_head_kernel(%arg0: i32, %arg1: i32, %arg2: memref<2x8x32xf32, #tpu.memory_space<vmem>>, %arg3: memref<2x8x1xf32, #tpu.memory_space<vmem>>, %arg4: memref<32x128xf32, #tpu.memory_space<vmem>>, %arg5: memref<1x128xf32, #tpu.memory_space<vmem>>, %arg6: memref<2x128xf32, #tpu.memory_space<vmem>>, %arg7: memref<2x32xf32, #tpu.memory_space<vmem>>, %arg8: memref<2x1xf32, #tpu.memory_space<vmem>>) attributes {dimension_semantics = [#tpu.dimension_semantics<parallel>, #tpu.dimension_semantics<arbitrary>], iteration_bounds = array<i64: 1, 2>, scalar_prefetch = 0 : i64, scratch_operands = 2 : i64, tpu.core_type = #tpu.core_type<tc>, window_params = [{transform_indices = @transform_0, window_bounds = array<i64: 2, 8, 32>}, {transform_indices = @transform_1, window_bounds = array<i64: 2, 8, 1>}, {pipeline_mode = #tpu.pipeline_mode<synchronous>, transform_indices = @transform_2, window_bounds = array<i64: 32, 128>}, {pipeline_mode = #tpu.pipeline_mode<synchronous>, transform_indices = @transform_3, window_bounds = array<i64: 1, 128>}, {transform_indices = @transform_4, window_bounds = array<i64: 2, 128>}]} {
    %c0_i32 = arith.constant 0 : i32
    %0 = arith.cmpi eq, %arg1, %c0_i32 : i32
    %1 = arith.extui %0 : i1 to i32
    %c0_i32_0 = arith.constant 0 : i32
    %2 = arith.cmpi ne, %1, %c0_i32_0 : i32
    scf.if %2 {
      %cst_16 = arith.constant 0.000000e+00 : f32
      %18 = vector.broadcast %cst_16 : f32 to vector<2x32xf32>
      %c0_17 = arith.constant 0 : index
      %c0_18 = arith.constant 0 : index
      %19 = vector.load %arg7[%c0_17, %c0_18] : memref<2x32xf32, #tpu.memory_space<vmem>>, vector<2x32xf32>
      tpu.vector_store %arg7[%c0_17, %c0_18], %18 {strides = array<i32>} : memref<2x32xf32, #tpu.memory_space<vmem>>, vector<2x32xf32>,
      %cst_19 = arith.constant 0.000000e+00 : f32
      %20 = vector.broadcast %cst_19 : f32 to vector<2x1xf32>
      %c0_20 = arith.constant 0 : index
      %c0_21 = arith.constant 0 : index
      %21 = vector.load %arg8[%c0_20, %c0_21] : memref<2x1xf32, #tpu.memory_space<vmem>>, vector<2x1xf32>
      tpu.vector_store %arg8[%c0_20, %c0_21], %20 {strides = array<i32>} : memref<2x1xf32, #tpu.memory_space<vmem>>, vector<2x1xf32>,
    } else {
    }
    %c0 = arith.constant 0 : index
    %c0_1 = arith.constant 0 : index
    %c0_2 = arith.constant 0 : index
    %3 = vector.load %arg2[%c0, %c0_1, %c0_2] : memref<2x8x32xf32, #tpu.memory_space<vmem>>, vector<2x8x32xf32>
    %c0_3 = arith.constant 0 : index
    %c0_4 = arith.constant 0 : index
    %c0_5 = arith.constant 0 : index
    %4 = vector.load %arg3[%c0_3, %c0_4, %c0_5] : memref<2x8x1xf32, #tpu.memory_space<vmem>>, vector<2x8x1xf32>
    %c0_6 = arith.constant 0 : index
    %c0_7 = arith.constant 0 : index
    %5 = vector.load %arg7[%c0_6, %c0_7] : memref<2x32xf32, #tpu.memory_space<vmem>>, vector<2x32xf32>
    %6 = vector.broadcast %4 : vector<2x8x1xf32> to vector<2x8x32xf32>
    %7 = arith.mulf %3, %6 : vector<2x8x32xf32>
    %cst = arith.constant dense<0.000000e+00> : vector<2x32xf32>
    %8 = vector.multi_reduction <add>, %7, %cst [1] : vector<2x8x32xf32> to vector<2x32xf32>
    %9 = arith.addf %5, %8 : vector<2x32xf32>
    %c0_8 = arith.constant 0 : index
    %c0_9 = arith.constant 0 : index
    %10 = vector.load %arg7[%c0_8, %c0_9] : memref<2x32xf32, #tpu.memory_space<vmem>>, vector<2x32xf32>
    tpu.vector_store %arg7[%c0_8, %c0_9], %9 {strides = array<i32>} : memref<2x32xf32, #tpu.memory_space<vmem>>, vector<2x32xf32>,
    %c0_10 = arith.constant 0 : index
    %c0_11 = arith.constant 0 : index
    %11 = vector.load %arg8[%c0_10, %c0_11] : memref<2x1xf32, #tpu.memory_space<vmem>>, vector<2x1xf32>
    %cst_12 = arith.constant dense<0.000000e+00> : vector<2x1xf32>
    %12 = vector.multi_reduction <add>, %4, %cst_12 [1] : vector<2x8x1xf32> to vector<2x1xf32>
    %13 = arith.addf %11, %12 : vector<2x1xf32>
    %c0_13 = arith.constant 0 : index
    %c0_14 = arith.constant 0 : index
    %14 = vector.load %arg8[%c0_13, %c0_14] : memref<2x1xf32, #tpu.memory_space<vmem>>, vector<2x1xf32>
    tpu.vector_store %arg8[%c0_13, %c0_14], %13 {strides = array<i32>} : memref<2x1xf32, #tpu.memory_space<vmem>>, vector<2x1xf32>,
    %c1_i32 = arith.constant 1 : i32
    %15 = arith.cmpi eq, %arg1, %c1_i32 : i32
    %16 = arith.extui %15 : i1 to i32
    %c0_i32_15 = arith.constant 0 : i32
    %17 = arith.cmpi ne, %16, %c0_i32_15 : i32
    scf.if %17 {
      %c0_16 = arith.constant 0 : index
      %c0_17 = arith.constant 0 : index
      %18 = vector.load %arg7[%c0_16, %c0_17] : memref<2x32xf32, #tpu.memory_space<vmem>>, vector<2x32xf32>
      %c0_18 = arith.constant 0 : index
      %c0_19 = arith.constant 0 : index
      %19 = vector.load %arg8[%c0_18, %c0_19] : memref<2x1xf32, #tpu.memory_space<vmem>>, vector<2x1xf32>
      %cst_20 = arith.constant 9.99999971E-10 : f32
      %20 = vector.broadcast %cst_20 : f32 to vector<2x1xf32>
      %21 = arith.maximumf %19, %20 : vector<2x1xf32>
      %22 = vector.broadcast %21 : vector<2x1xf32> to vector<2x32xf32>
      %23 = arith.divf %18, %22 : vector<2x32xf32>
      %c0_21 = arith.constant 0 : index
      %c0_22 = arith.constant 0 : index
      %24 = vector.load %arg4[%c0_21, %c0_22] : memref<32x128xf32, #tpu.memory_space<vmem>>, vector<32x128xf32>
      %cst_23 = arith.constant dense<0.000000e+00> : vector<2x128xf32>
      %25 = tpu.matmul %23, %24, %cst_23 {dimension_numbers = #tpu.dot_dimension_numbers<[1], [0], [0], [1], [0, 0, 1, 1], [], []>} : vector<2x32xf32>, vector<32x128xf32>, vector<2x128xf32> -> vector<2x128xf32>
      %c0_24 = arith.constant 0 : index
      %c0_25 = arith.constant 0 : index
      %26 = vector.load %arg5[%c0_24, %c0_25] : memref<1x128xf32, #tpu.memory_space<vmem>>, vector<1x128xf32>
      %27 = vector.broadcast %26 : vector<1x128xf32> to vector<2x128xf32>
      %28 = arith.addf %25, %27 : vector<2x128xf32>
      %c0_26 = arith.constant 0 : index
      %c0_27 = arith.constant 0 : index
      %29 = vector.load %arg6[%c0_26, %c0_27] : memref<2x128xf32, #tpu.memory_space<vmem>>, vector<2x128xf32>
      tpu.vector_store %arg6[%c0_26, %c0_27], %28 {strides = array<i32>} : memref<2x128xf32, #tpu.memory_space<vmem>>, vector<2x128xf32>,
    } else {
    }
    return
  }
  func.func @transform_0(%arg0: i32, %arg1: i32) -> (i32, i32, i32) {
    %c0_i32 = arith.constant 0 : i32
    %c0_i32_0 = arith.constant 0 : i32
    return %arg0, %arg1, %c0_i32 : i32, i32, i32
  }
  func.func @transform_1(%arg0: i32, %arg1: i32) -> (i32, i32, i32) {
    %c0_i32 = arith.constant 0 : i32
    %c0_i32_0 = arith.constant 0 : i32
    return %arg0, %arg1, %c0_i32 : i32, i32, i32
  }
  func.func @transform_2(%arg0: i32, %arg1: i32) -> (i32, i32) {
    %c0_i32 = arith.constant 0 : i32
    %c0_i32_0 = arith.constant 0 : i32
    %c0_i32_1 = arith.constant 0 : i32
    return %c0_i32, %c0_i32_0 : i32, i32
  }
  func.func @transform_3(%arg0: i32, %arg1: i32) -> (i32, i32) {
    %c0_i32 = arith.constant 0 : i32
    %c0_i32_0 = arith.constant 0 : i32
    %c0_i32_1 = arith.constant 0 : i32
    return %c0_i32, %c0_i32_0 : i32, i32
  }
  func.func @transform_4(%arg0: i32, %arg1: i32) -> (i32, i32) {
    %c0_i32 = arith.constant 0 : i32
    %c0_i32_0 = arith.constant 0 : i32
    return %arg0, %c0_i32 : i32, i32
  }
}

</mosaic_0001>

<bundles_post_ra>
// kernel: tpu_custom_call.1
= control target key start
LH: loop header
LB: loop body
LE: loop exit
PB: predicated region body
PF: predicated region fallthrough
CT: control target
= control target key end

     0   :  { %s1277_s0 = inlined_call_operand.hbm [shape: f32[2,16,32], index: 0, kind: input, shape index: {}]   ;;  %s1278_s1 = inlined_call_operand.hbm [shape: f32[2,16,1], index: 1, kind: input, shape index: {}]   ;;  %s1279_s2 = inlined_call_operand.hbm [shape: f32[32,128], index: 2, kind: input, shape index: {}]   ;;  %s1280_s3 = inlined_call_operand.hbm [shape: f32[1,128], index: 3, kind: input, shape index: {}]   ;;  %s1281_s4 = inlined_call_operand.hbm [shape: f32[2,128], index: 4, kind: output, shape index: {}]  }
   0x1   :  { %1286 = sst [smem:[#allocation18_spill]] %s1277_s0 }
   0x2   :  { %9 = vsyncpa [#allocation5], 0 }
   0x3   :  { %11 = vsyncpa [#allocation5 + $0x1], 0 }
   0x4   :  { %12 = vsyncpa [#allocation8], 0 }
   0x5   :  { %14 = vsyncpa [#allocation8 + $0x1], 0 }
   0x6   :  { %15 = vsyncpa [#allocation11], 0 }
   0x7   :  { %16 = vsyncpa [#allocation6], 0  ;;  %s978_s15 = smov 0   ;;  %s980_s16 = smov 0  }
   0x8   :  { %s982_s17 = smov 0   ;;  %s984_s18 = smov 0  }
   0x9   :  { %s986_s19 = smov 0   ;;  %s988_s20 = smov 0  }
   0xa LB: > { %s1007_s21 = sadd.s32 4294967295, %s937_s20   ;;  %s43_s22 = sadd.s32 1, %s925_s17  ;;  %s937_s20 = sphi %s988_s20, %s22_s20   ;;  %s933_s19 = sphi %s986_s19, %s1304_s19   ;;  %s929_s18 = sphi %s984_s18, %s1303_s18   ;;  %s925_s17 = sphi %s982_s17, %s1302_s17   ;;  %s921_s16 = sphi %s980_s16, %s1301_s16   ;;  %s917_s15 = sphi %s978_s15, %s1300_s15  }
   0xb   : > { %p50_p0 = scmp.ne.s32.totalorder %s925_s17, %s921_s16  ;;  %p51_p1 = scmp.eq.s32.totalorder %s937_s20, 0 }
   0xc   : > { %p56_p2 = scmp.ne.s32.totalorder %s921_s16, %s917_s15  ;;  %p1282_p3 = scmp.eq.s32.totalorder %s1007_s21, 0 }
   0xd   : > { %p52_p4 = por %p51_p1, %p50_p0  ;;  %p585_p5 = scmp.ge.s32.totalorder %s937_s20, 1 }
   0xe   : > { %p1018_p6 = por %p1282_p3, %p56_p2  ;;  %p163_p7 = scmp.lt.s32.totalorder %s937_s20, 3 }
   0xf   : > { %s939_s25 = smov [#allocation9]   ;;  %p660_p10 = scmp.lt.s32.totalorder %s937_s20, 2 }
  0x10   : > { %s1287_s23 = scalar_select %p1018_p6, 1, 0 }
  0x11   : > { %p1023_p8 = pnand %p585_p5, %p163_p7  ;;  %s175_s26 = sshll.u32 %s939_s25, 4  ;;  %s1027_s26 = int_to_ptr.vmem [resolvable:$true] %s175_s26 }
  0x12   : > { %p1038_p12 = pnand %p660_p10, %p52_p4  ;;  %s940_s29 = smov [#allocation10]  }
  0x13   : > { %s1288_s24 = scalar_select %p1023_p8, 1, 0 }
  0x14   : > { %p644_p9 = pneg %p1023_p8  ;;  %s189_s30 = sshll.u32 %s940_s29, 4  ;;  %s1042_s30 = int_to_ptr.vmem [resolvable:$true] %s189_s30 }
  0x15   : > { %s729_s7 = scalar_lea.hbm %s1279_s2, 512 }
  0x16   : > { %p1034_p11 = pnand %p644_p9, %p1282_p3  ;;  %p730_p13 = scmp.ne.s32.totalorder %s1279_s2, %s729_s7 }
  0x17   : > { %p736_p4 = scmp.lt.u32.totalorder %s729_s7, %s1279_s2 }
  0x18   : > { %p731_p0 = pneg %p1034_p11 }
  0x1a   : > { %p732_p1 = pnand %p731_p0, %p730_p13 }
  0x1c   : > { %p733_p2 = pneg %p732_p1 }
  0x1e   : > { %p738_p5 = pnand %p736_p4, %p733_p2 }
  0x20   : > { %741 = shalt.err (!%p738_p5)
}
  0x21   : > { %s742_s12 = scalar_lea.vmem %s1027_s26, 512  ;;  %p750_p3 = scmp.lt.s32.totalorder %s1027_s26, %s1027_s26 }
  0x22   : > { %p743_p7 = scmp.ne.s32.totalorder %s1027_s26, %s742_s12  ;;  %p751_p13 = scmp.lt.s32.totalorder %s742_s12, %s742_s12 }
  0x24   : > { %p745_p9 = pnand %p743_p7, %p731_p0  ;;  %p752_p1 = por %p751_p13, %p750_p3 }
  0x26   : > { %p746_p10 = pneg %p745_p9 }
  0x28   : > { %p753_p6 = pnand %p752_p1, %p746_p10 }
  0x2a   : > { %756 = shalt.err (!%p753_p6)
}
  0x2b   : > { %s941_s13 = smov 128   ;;  %s942_s14 = smov 8  }
  0x2c   : > { %647 = dma.hbm_to_vmem [thread:$0]  (!%p1034_p11), %s1279_s2, 512, %s1027_s26, [#allocation8], %s941_s13, %s941_s13, %s942_s14  }
  0x2d   : > { %s757_s6 = scalar_lea.hbm %s1280_s3, 16 }
  0x2e   : > { %p758_p3 = scmp.ne.s32.totalorder %s1280_s3, %s757_s6  ;;  %p764_p4 = scmp.lt.u32.totalorder %s757_s6, %s1280_s3 }
  0x30   : > { %p760_p6 = pnand %p758_p3, %p731_p0 }
  0x32   : > { %p761_p2 = pneg %p760_p6 }
  0x34   : > { %p766_p5 = pnand %p764_p4, %p761_p2 }
  0x36   : > { %769 = shalt.err (!%p766_p5)
}
  0x37   : > { %s770_s26 = scalar_lea.vmem %s1042_s30, 16  ;;  %s777_s11 = scalar_lea.vmem %s1042_s30, 32 }
  0x38   : > { %p771_p7 = scmp.ne.s32.totalorder %s1042_s30, %s770_s26  ;;  %p778_p13 = scmp.lt.s32.totalorder %s1042_s30, %s1042_s30 }
  0x39   : > { %p779_p1 = scmp.lt.s32.totalorder %s777_s11, %s770_s26 }
  0x3a   : > { %p773_p9 = pnand %p771_p7, %p731_p0 }
  0x3b   : > { %p780_p3 = por %p779_p1, %p778_p13 }
  0x3c   : > { %p774_p10 = pneg %p773_p9 }
  0x3e   : > { %p781_p6 = pnand %p780_p3, %p774_p10 }
  0x40   : > { %784 = shalt.err (!%p781_p6)
}
  0x41   : > { %650 = dma.hbm_to_vmem [thread:$0]  (!%p1034_p11), %s1280_s3, 16, %s1042_s30, [#allocation11]  }
  0x42   : > { %s200_s25 = sand.u32 1, %s925_s17   ;;  %s31_s29 = sadd.s32 1, %s933_s19 }
  0x43   : > { %p32_p0 = scmp.ge.s32.totalorder %s31_s29, 2  ;;  %s1102_s5 = sshll.u32 %s200_s25, 4 }
  0x44   : > { %s1284_s6 = sshll.u32 %s933_s19, 7  ;;  %s1291_s0 = sld [smem:[#allocation18_spill]] }
  0x45   : > { %s1306_s29 = smov (%p32_p0, %s31_s29), 0  ;;  %s204_s30 = scalar_lea.vmem [#allocation4], %s1102_s5 }
  0x46   : > { %s213_s9 = sshll.u32 %s204_s30, 4  ;;  %s39_s10 = ssub.s32 %s933_s19, %s1306_s29  ;;  %s1117_s9 = int_to_ptr.vmem [resolvable:$true] %s213_s9 }
  0x47   : > { %p1119_p11 = scmp.eq.s32.totalorder %s39_s10, 0  ;;  %s1123_s11 = scalar_lea.sflag [#allocation5], %s200_s25 }
  0x48   : > { %p787_p4 = pneg %p1038_p12 }
  0x4a   : > { %s1112_s8 = scalar_lea.hbm %s1291_s0, %s1284_s6  ;;  %s790_s7 = scalar_lea.hbm %s1291_s0, 512 }
  0x4b   : > { %s785_s12 = scalar_lea.hbm %s1112_s8, 256  ;;  %p791_p9 = scmp.lt.u32.totalorder %s1112_s8, %s1291_s0 }
  0x4c   : > { %p786_p2 = scmp.ne.s32.totalorder %s1112_s8, %s785_s12  ;;  %p792_p10 = scmp.lt.u32.totalorder %s790_s7, %s785_s12 }
  0x4d   : > { %p794_p1 = scmp.lt.u32.totalorder %s785_s12, %s1112_s8 }
  0x4e   : > { %p788_p5 = pnand %p787_p4, %p786_p2  ;;  %p793_p13 = por %p792_p10, %p791_p9 }
  0x50   : > { %p789_p7 = pneg %p788_p5  ;;  %p795_p3 = por %p794_p1, %p793_p13 }
  0x52   : > { %p796_p6 = pnand %p795_p3, %p789_p7 }
  0x54   : > { %799 = shalt.err (!%p796_p6)
}
  0x55   : > { %s800_s25 = scalar_lea.vmem %s1117_s9, 256  ;;  %s943_s10 = smov [#allocation4]  }
  0x56   : > { %p801_p0 = scmp.ne.s32.totalorder %s1117_s9, %s800_s25  ;;  %s805_s15 = sshll.u32 %s943_s10, 4  ;;  %s806_s15 = int_to_ptr.vmem [resolvable:$false] %s805_s15 }
  0x57   : > { %s807_s6 = scalar_lea.vmem %s806_s15, 512  ;;  %p808_p8 = scmp.lt.s32.totalorder %s1117_s9, %s806_s15 }
  0x58   : > { %p803_p2 = pnand %p801_p0, %p787_p4  ;;  %p809_p9 = scmp.lt.s32.totalorder %s807_s6, %s800_s25 }
  0x5a   : > { %p804_p5 = pneg %p803_p2  ;;  %p810_p10 = por %p809_p9, %p808_p8 }
  0x5c   : > { %p811_p13 = pnand %p810_p10, %p804_p5 }
  0x5e   : > { %814 = shalt.err (!%p811_p13)
}
  0x5f   : > { %s944_s12 = smov 256   ;;  %s1293_s7 = sshll.u32 %s933_s19, 7 }
  0x60   : > { %654 = dma.hbm_to_vmem [thread:$0]  (!%p1038_p12), %s1112_s8, 256, %s1117_s9, %s1123_s11, %s944_s12, %s941_s13, %s942_s14  }
  0x61   : > { %s1159_s27 = scalar_select %p1119_p11, %s925_s17, %s43_s22  }
  0x62   : > { %s1166_s10 = scalar_lea.hbm %s1278_s1, %s1293_s7  ;;  %s227_s15 = scalar_lea.vmem [#allocation7], %s1102_s5 }
  0x63   : > { %s236_s6 = sshll.u32 %s227_s15, 4  ;;  %s223_s0 = sand.u32 1, %s937_s20   ;;  %s1170_s6 = int_to_ptr.vmem [resolvable:$true] %s236_s6 }
  0x64   : > { %s1172_s8 = scalar_lea.sflag [#allocation8], %s223_s0  ;;  %s815_s9 = scalar_lea.hbm %s1166_s10, 256 }
  0x65   : > { %p816_p8 = scmp.ne.s32.totalorder %s1166_s10, %s815_s9  ;;  %s820_s11 = scalar_lea.hbm %s1278_s1, 512 }
  0x66   : > { %p821_p1 = scmp.lt.u32.totalorder %s1166_s10, %s1278_s1  ;;  %p822_p3 = scmp.lt.u32.totalorder %s820_s11, %s815_s9 }
  0x67   : > { %p818_p11 = pnand %p816_p8, %p787_p4  ;;  %p824_p0 = scmp.lt.u32.totalorder %s815_s9, %s1166_s10 }
  0x68   : > { %p823_p6 = por %p822_p3, %p821_p1 }
  0x69   : > { %p819_p7 = pneg %p818_p11 }
  0x6a   : > { %p825_p2 = por %p824_p0, %p823_p6 }
  0x6c   : > { %p826_p5 = pnand %p825_p2, %p819_p7 }
  0x6e   : > { %829 = shalt.err (!%p826_p5)
}
  0x6f   : > { %s830_s0 = scalar_lea.vmem %s1170_s6, 256  ;;  %s945_s5 = smov [#allocation7]  }
  0x70   : > { %p831_p9 = scmp.ne.s32.totalorder %s1170_s6, %s830_s0  ;;  %s835_s25 = sshll.u32 %s945_s5, 4  ;;  %s836_s25 = int_to_ptr.vmem [resolvable:$false] %s835_s25 }
  0x71   : > { %s837_s15 = scalar_lea.vmem %s836_s25, 512  ;;  %p838_p8 = scmp.lt.s32.totalorder %s1170_s6, %s836_s25 }
  0x72   : > { %p833_p10 = pnand %p831_p9, %p787_p4  ;;  %p839_p11 = scmp.lt.s32.totalorder %s837_s15, %s830_s0 }
  0x74   : > { %p834_p13 = pneg %p833_p10  ;;  %p840_p1 = por %p839_p11, %p838_p8 }
  0x76   : > { %p841_p3 = pnand %p840_p1, %p834_p13 }
  0x78   : > { %844 = shalt.err (!%p841_p3)
}
  0x79   : > { %657 = dma.hbm_to_vmem [thread:$0]  (!%p1038_p12), %s1166_s10, 256, %s1170_s6, %s1172_s8, %s944_s12, %s941_s13, %s942_s14  }
  0x7a   : > { %p1294_p4 = scmp.ne.s32.totalorder %s1288_s24, 0 }
  0x7b   : > { %s250_s9 = sand.u32 (!%p1294_p4), 1, %s921_s16   ;;  %p1295_p7 = scmp.ne.s32.totalorder (!%p1294_p4), %s1287_s23, 0 }
  0x7c   : > { %248 = sbr.rel (%p1294_p4) target bundleno = 559 (0x22f), region = 36  ;;  %s1204_s22 = sshll.u32 (!%p1294_p4), %s250_s9, 4 }
  0x7d   : > { %s251_s26 = scalar_lea.sflag (!%p1294_p4), [#allocation5], %s250_s9  ;;  %s254_s11 = scalar_lea.vmem (!%p1294_p4), [#allocation4], %s1204_s22 }
  0x83   : > { %896 = dma.done.wait (%p1295_p7), %s251_s26, 256  }
  0x84   : > { %898 = vsyncadd (%p1295_p7), %s251_s26, 4294967040  ;;  %s259_s28 = sand.u32 1, %s1007_s21   ;;  %s263_s24 = scalar_lea.vmem [#allocation7], %s1204_s22 }
  0x85   : > { %s260_s13 = scalar_lea.sflag [#allocation8], %s259_s28 }
  0x86   : > { %900 = dma.done.wait (%p1295_p7), %s260_s13, 256  }
  0x87   : > { %902 = vsyncadd (%p1295_p7), %s260_s13, 4294967040  ;;  %p1296_p12 = scmp.eq.s32.totalorder %s1007_s21, 0 }
  0x89   : > { %904 = dma.done.wait (%p1296_p12), [#allocation8], 512   ;;  %p1297_p6 = pmov %p1296_p12 }
  0x8b   : > { %906 = vsyncadd (%p1297_p6), [#allocation8], 4294966784  ;;  %p1298_p0 = pmov %p1297_p6 }
  0x8d   : > { %908 = dma.done.wait (%p1298_p0), [#allocation11], 16   ;;  %p1299_p2 = pmov %p1298_p0 }
  0x8e   : > { %p598_p5 = scmp.ne.s32.totalorder %s929_s18, 0 }
  0x8f   : > { %910 = vsyncadd (%p1299_p2), [#allocation11], 4294967280  ;;  %vm302_vm0 = vcmask (!%p598_p5), 254976   ;;  %vm304_vm1 = vcmask (!%p598_p5), 1024   ;;  %v946_v0 = vmov (!%p598_p5), 0.0  }
  0x90   : > { %301 = sbr.rel (%p598_p5) target bundleno = 151 (0x97), region = 56  ;;  %303 = vst.msk [vmem:[#allocation2] sm:$0x3] (!%p598_p5), %vm302_vm0, %v946_v0 }
  0x91   : > { %305 = vst.msk [vmem:[#allocation3] sm:$0x3] (!%p598_p5), %vm304_vm1, %v946_v0 }
  0x97 PF: > { %v308_v1 = vld [vmem:[%s263_s24] sm:$0xff]  ;;  %vm347_vm2 = vcmask 7168   ;;  %v309_v2 = vld [vmem:[%s263_s24 + $0x8] sm:$0xff]  ;;  %v947_v3 = vmov 0   ;;  %vm340_vm3 = vcmask 1041409   ;;  %vm367_vm4 = vcmask 1024  }
  0x98   : > { %725 = vset.pattern.permute.xlu0 %v947_v3  ;;  %v348_v4 = vsel %vm347_vm2, %v308_v1, 0.0  ;;  %v355_v5 = vsel %vm347_vm2, %v309_v2, 0.0  ;;  %v346_v17 = vld [vmem:[#allocation3] sm:$0x3]  ;;  %v306_v21 = vld [vmem:[%s254_s11] sm:$0xff]  ;;  %vm323_vm5 = vcmask 261120  }
  0x99   : > { %313 = vperm.xlu0 %725, %v308_v1   ;;  %v349_v6 = vrot.slane %v348_v4, 4  ;;  %v356_v7 = vrot.slane %v355_v5, 4  ;;  %v307_v24 = vld [vmem:[%s254_s11 + $0x8] sm:$0xff]  ;;  %vm344_vm6 = vcmask 254976   ;;  %p599_p9 = scmp.ne.s32.totalorder %s929_s18, 1 }
  0x9a   : > { %v310_v40 = vld [vmem:[#allocation2] sm:$0x3]  ;;  %v948_v45 = vmov (!%p599_p9), 0   ;;  %v383_v47 = vld [vmem:[#allocation9] sm:$0xff] (!%p599_p9)  ;;  %v384_v48 = vld [vmem:[#allocation9 + $0x8] sm:$0xff] (!%p599_p9)  ;;  %v949_v50 = vmov (!%p599_p9), 0.0|0.0  }
  0x9b   : > { %v350_v8 = vadd.f32 %v349_v6, %v348_v4  ;;  %v357_v9 = vadd.f32 %v356_v7, %v355_v5  ;;  %v385_v49 = vld [vmem:[#allocation9 + $0x10] sm:$0xff] (!%p599_p9)  ;;  %622 = vmatprep.subr.bf16.mxu0 (!%p599_p9), %v949_v50  ;;  %v623_v51 = vpack.c.bf16 (!%p599_p9), %v384_v48, %v383_v47  ;;  %v386_v52 = vld [vmem:[#allocation9 + $0x18] sm:$0xff] (!%p599_p9)  ;;  %vm950_vm7 = vmmov (!%p599_p9), 0   ;;  %v600_v59 = vld [vmem:[#allocation10] ss:$0 sm:$0xff] (!%p599_p9) }
  0x9c   : > { %v951_v53 = vmov (!%p599_p9), 0.0   ;;  %v626_v54 = vpack.c.bf16 (!%p599_p9), %v386_v52, %v385_v49 }
  0x9d   : > { %v351_v10 = vrot.slane %v350_v8, 2  ;;  %v358_v11 = vrot.slane %v357_v9, 2  ;;  %318 = vperm.xlu0 %725, %v309_v2   ;;  %619 = vmatprep.mubr.msk.f32.mxu0 (!%p599_p9), %vm950_vm7, %v951_v53 }
  0x9e   : > { %624 = vmatpush3.bf16.msra.mxu0 (!%p599_p9), %v623_v51 }
  0x9f   : > { %v352_v12 = vadd.f32 %v351_v10, %v350_v8  ;;  %v359_v13 = vadd.f32 %v358_v11, %v357_v9  ;;  %625 = vmatprep.subr.bf16.mxu0 (!%p599_p9), %v949_v50 }
  0xa1   : > { %v353_v14 = vrot.slane %v352_v12, 1  ;;  %v360_v15 = vrot.slane %v359_v13, 1  ;;  %726 = vset.pattern.permute.xlu0 (!%p599_p9), %v948_v45 }
  0xa2   : > { %627 = vmatpush3.bf16.msra.mxu0 (!%p599_p9), %v626_v54 }
  0xa3   : > { %v354_v16 = vadd.f32 %v353_v14, %v352_v12  ;;  %v361_v18 = vadd.f32 %v360_v15, %v359_v13 }
  0xa5   : > { %v364_v19 = vsel %vm340_vm3, %v361_v18, %v354_v16 }
  0xa6   : > { %v366_v20 = vadd.f32 %v364_v19, %v346_v17 }
  0xa8   : > { %368 = vst.msk [vmem:[#allocation3] sm:$0x3] %vm367_vm4, %v366_v20 }
  0xaf   : > { %v374_v44 = vld [vmem:[#allocation3] sm:$0x3] (!%p599_p9) }
  0xb0   : > { %v375_v46 = vmax.f32 (!%p599_p9), %v374_v44, 1e-09 }
  0xb2   : > { %378 = vperm.xlu0 (!%p599_p9), %726, %v375_v46  }
 0x118   : > { %v314_v22 = vpop.permute.xlu0 %313 }
 0x119   : > { %v321_v23 = vmul.f32 %v314_v22, %v306_v21 }
 0x11b   : > { %v324_v25 = vsel %vm323_vm5, %v321_v23, 0.0 }
 0x11c   : > { %v325_v26 = vrot.slane %v324_v25, 4  ;;  %v319_v27 = vpop.permute.xlu0 %318 }
 0x11d   : > { %v322_v28 = vmul.f32 %v319_v27, %v307_v24 }
 0x11e   : > { %v326_v29 = vadd.f32 %v325_v26, %v324_v25 }
 0x11f   : > { %v331_v30 = vsel %vm323_vm5, %v322_v28, 0.0 }
 0x120   : > { %v327_v31 = vrot.slane %v326_v29, 2  ;;  %v332_v32 = vrot.slane %v331_v30, 4 }
 0x122   : > { %v328_v33 = vadd.f32 %v327_v31, %v326_v29  ;;  %v333_v34 = vadd.f32 %v332_v32, %v331_v30 }
 0x124   : > { %v334_v35 = vrot.slane %v333_v34, 2  ;;  %v329_v36 = vrot.slane %v328_v33, 1 }
 0x126   : > { %v335_v37 = vadd.f32 %v334_v35, %v333_v34  ;;  %v330_v39 = vadd.f32 %v329_v36, %v328_v33 }
 0x128   : > { %v336_v38 = vrot.slane %v335_v37, 1 }
 0x129   : > { %372 = sbr.rel (%p599_p9) target bundleno = 534 (0x216), region = 60 }
 0x12a   : > { %v337_v41 = vadd.f32 %v336_v38, %v335_v37 }
 0x12c   : > { %v341_v42 = vsel %vm340_vm3, %v337_v41, %v330_v39 }
 0x12d   : > { %v343_v43 = vadd.f32 %v341_v42, %v310_v40 }
 0x12f   : > { %345 = vst.msk [vmem:[#allocation2] sm:$0x3] %vm344_vm6, %v343_v43 }
 0x131   : > { %v379_v55 = vpop.permute.xlu0 %378 }
 0x132   : > { %727 = vrcp.f32 %v379_v55 }
 0x136   : > { %v373_v56 = vld [vmem:[#allocation2] sm:$0x3] }
 0x13c   : > { %v728_v57 = vpop.eup %727 }
 0x13d   : > { %v382_v58 = vmul.f32 %v728_v57, %v373_v56 }
 0x13f   : > { %620 = vmatmul.mubr.msk.f32.vlgmr.msra.gmra.mrb[0].mxu0 %vm323_vm5, %v382_v58 }
 0x212   : > { %v463_v60 = vpop.f32.mrb[0].mxu0 }
 0x213   : > { %v464_v61 = vadd.f32 %v600_v59, %v463_v60  ;;  %v621_v62 = vpop.f32.mrb[1].mxu0 }
 0x215   : > { %467 = vst [vmem:[#allocation12] sm:$0x3] %v464_v61 }
 0x216 PF: > { %p663_p10 = scmp.eq.s32.totalorder %s1007_s21, 1  ;;  %s952_s18 = smov [#allocation12]  }
 0x217   : > { %s477_s23 = sshll.u32 %s952_s18, 4  ;;  %s478_s23 = int_to_ptr.vmem [resolvable:$true] %s477_s23 }
 0x218   : > { %s845_s14 = scalar_lea.vmem %s478_s23, 32  ;;  %p852_p1 = scmp.lt.s32.totalorder %s478_s23, %s478_s23 }
 0x219   : > { %p846_p13 = scmp.ne.s32.totalorder %s478_s23, %s845_s14  ;;  %p853_p3 = scmp.lt.s32.totalorder %s845_s14, %s845_s14 }
 0x21b   : > { %p847_p8 = pnand %p846_p13, %p663_p10  ;;  %p854_p4 = por %p853_p3, %p852_p1 }
 0x21d   : > { %p848_p11 = pneg %p847_p8 }
 0x21f   : > { %p855_p7 = pnand %p854_p4, %p848_p11 }
 0x221   : > { %858 = shalt.err (!%p855_p7)
}
 0x222   : > { %s859_s6 = scalar_lea.hbm %s1281_s4, 32 }
 0x223   : > { %p860_p12 = scmp.ne.s32.totalorder %s1281_s4, %s859_s6  ;;  %p865_p2 = scmp.lt.u32.totalorder %s859_s6, %s1281_s4 }
 0x225   : > { %p861_p6 = pnand %p860_p12, %p663_p10 }
 0x227   : > { %p862_p0 = pneg %p861_p6 }
 0x229   : > { %p867_p5 = pnand %p865_p2, %p862_p0 }
 0x22b   : > { %870 = shalt.err (!%p867_p5)
}
 0x22c   : > { %641 = dma.vmem_to_hbm [thread:$0]  (%p663_p10), %s478_s23, 32, %s1281_s4, [#allocation6]  }
 0x22d   : > { %912 = dma.done.wait (%p663_p10), [#allocation6], 32  }
 0x22e   : > { %914 = vsyncadd (%p663_p10), [#allocation6], 4294967264 }
 0x22f PF: > { %s22_s20 = sadd.s32 1, %s937_s20   ;;  %s1300_s15 = smov %s921_s16 }
 0x230   : > { %p19_p9 = scmp.ge.s32.totalorder %s22_s20, 4   ;;  %s1301_s16 = smov %s925_s17 }
 0x231   : > { %s1302_s17 = smov %s1159_s27  ;;  %s1303_s18 = smov %s933_s19 }
 0x232   : > { %s1304_s19 = smov %s1306_s29  ;;  %21 = sbr.rel (!%p19_p9) target bundleno = 10 (0xa), region = 103 }
 0x239   :  { %490 = vsyncpa [#allocation5], 1 }
 0x23a   :  { %492 = vsyncpa [#allocation5 + $0x1], 1 }
 0x23b   :  { %493 = vsyncpa [#allocation8], 1 }
 0x23c   :  { %495 = vsyncpa [#allocation8 + $0x1], 1 }
 0x23d   :  { %496 = vsyncpa [#allocation11], 1 }
 0x23e   :  { %497 = vsyncpa [#allocation6], 1 }
 0x23f   :  { %499 = vsyncpa [#allocation6 + $0x1], 1 }

</bundles_post_ra>
